<compile_context>
chip_gen: v6e
topology: v6e:2x2x1
jax: 0.10.0
libtpu: 0.0.40
codegen_flags: <defaults>
</compile_context>

<pallas_src>
import functools

import numpy as np

import jax
import jax.numpy as jnp
from jax.experimental import pallas as pl
from jax.experimental.pallas import tpu as pltpu


def _margin_kernel(x_ref, out_ref, *, margin, n, tb, mean, use_top_only):
    """x_ref: (N, TB) f32, lane b = utterance; out_ref: (1, TB) f32 partials."""
    N, TB = n, tb
    m = jnp.float32(margin)
    x = x_ref[...]                                            # (N, TB)

    if use_top_only:
        # pos = original index-0 score (wrapper packs it into row 0),
        # negs = ranked scores 1..N-1 (rows 1..N-1).
        pos = x[0:1, :]                                       # (1, TB)
        negs = x[1:, :]                                       # (N-1, TB)
        h = jnp.maximum(negs - pos + m, 0.0)
        s = jnp.sum(h, axis=0, keepdims=True)                 # (1, TB)
        if mean:
            s = s * jnp.float32(1.0 / (N - 1))
        out_ref[...] = s
    else:
        # Pairwise hinge over all (j, k) with k > j, vectorized across the
        # lane-batched utterances:  hinge[j, k, b] = max(0, x[k,b]-x[j,b]+m).
        xk = jnp.broadcast_to(x[None, :, :], (N, N, TB))      # [j,k,b] = x[k,b]
        xj = jnp.broadcast_to(x[:, None, :], (N, N, TB))      # [j,k,b] = x[j,b]
        hinge = jnp.maximum(xk - xj + m, 0.0)                 # (N, N, TB)

        j_idx = jax.lax.broadcasted_iota(jnp.int32, (N, N, TB), 0)
        k_idx = jax.lax.broadcasted_iota(jnp.int32, (N, N, TB), 1)
        w = (k_idx > j_idx).astype(jnp.float32)               # upper-triangular pairs
        if mean:
            # per-j mean over the N-1-j negatives (row j=N-1 has weight 0).
            denom = jnp.maximum(
                jnp.float32(N - 1) - j_idx.astype(jnp.float32), 1.0)
            w = w / denom

        acc = jnp.sum(hinge * w, axis=0)                      # (N, TB): VPU adds
        out_ref[...] = jnp.sum(acc, axis=0, keepdims=True)    # (1, TB): sublane reduce


def margin_rank_loss(scores, ranks, *, margin=0.0, reduction="mean",
                     use_top_only=False, block_b=128):
    """scores: flat (B*N,) f32; ranks: (B, N) int32 WER-rank permutations."""
    B, N = ranks.shape
    scores2 = scores.reshape(B, N).astype(jnp.float32)
    ranks2 = ranks.astype(jnp.int32)

    if N < 2:
        return jnp.zeros((1,), jnp.float32)

    # Hoist the rank gather to XLA: ranked[b, k] = scores[b, rank[b, k]].
    ranked = jnp.take_along_axis(scores2, ranks2, axis=1)      # (B, N)
    if use_top_only:
        # pos is the ORIGINAL index-0 score (matches the PyTorch module),
        # negs are ranked[:, 1:]; pack them as one (B, N) array.
        x = jnp.concatenate([scores2[:, 0:1], ranked[:, 1:]], axis=1)
    else:
        x = ranked

    TB = int(block_b)
    assert TB % 128 == 0, "lane-batch must be a multiple of 128"
    num_blocks = -(-B // TB)
    b_pad = num_blocks * TB

    # (N, B_pad): n-best on sublanes, utterances lane-dense; zero-pad lanes
    # (padded utterances are masked out of the final XLA reduction).
    x_t = jnp.pad(x.T, ((0, 0), (0, b_pad - B)))

    kernel = functools.partial(
        _margin_kernel, margin=float(margin), n=N, tb=TB,
        mean=(reduction == "mean"), use_top_only=bool(use_top_only))

    # NOTE: for large N, shrink TB so the (N, N, TB) f32 intermediate fits the
    # per-generation VMEM budget (v7x has half the VMEM of v5e/v6e).
    out = pl.pallas_call(
        kernel,
        out_shape=jax.ShapeDtypeStruct((num_blocks, 1, TB), jnp.float32),
        grid_spec=pltpu.PrefetchScalarGridSpec(
            num_scalar_prefetch=0,
            grid=(num_blocks,),
            in_specs=[pl.BlockSpec((N, TB), lambda i: (0, i))],
            out_specs=pl.BlockSpec((None, 1, TB), lambda i: (i, 0, 0)),
        ),
        compiler_params=pltpu.CompilerParams(
            dimension_semantics=("parallel",),
            vmem_limit_bytes=32 * 1024 * 1024,
        ),
    )(x_t)

    # Mask padded utterances and do the final reduction in XLA.
    valid = (jnp.arange(b_pad, dtype=jnp.int32) < B).astype(jnp.float32)
    total = jnp.sum(out.reshape(b_pad) * valid)
    return total.reshape(1)


def _reference(scores_flat, n_best, ranks, margin, reduction, use_top_only):
    total = np.float64(0.0)
    start = 0
    for b in range(ranks.shape[0]):
        N = n_best
        s = scores_flat[start:start + N].astype(np.float64)
        r = ranks[b]
        if use_top_only:
            neg = s[r[1:]]
            pos = s[0]
            l = np.maximum(0.0, neg - pos + margin)
            total += l.mean() if reduction == "mean" else l.sum()
        else:
            for j in range(N - 1):
                pos = s[r[j]]
                neg = s[r[j + 1:]]
                l = np.maximum(0.0, neg - pos + margin)
                total += l.mean() if reduction == "mean" else l.sum()
        start += N
    return np.array([total], dtype=np.float32)


def _make_case(key, B, N):
    k_scores, k_perm = jax.random.split(key)
    scores = jax.random.normal(k_scores, (B * N,), dtype=jnp.float32)
    perm_keys = jax.random.split(k_perm, B)
    ranks = jax.vmap(lambda k: jax.random.permutation(k, N))(perm_keys)
    return scores, ranks.astype(jnp.int32)


if __name__ == "__main__":
    margin = 0.1

    # Small case: 2 utterances, 8-best each (the module's default usage).
    B, N = 2, 8
    scores, ranks = _make_case(jax.random.PRNGKey(0), B, N)
    for use_top, red in [(False, "mean"), (True, "mean"), (False, "sum")]:
        out = margin_rank_loss(scores, ranks, margin=margin, reduction=red,
                               use_top_only=use_top)
        out = jax.block_until_ready(out)
        ref = _reference(np.asarray(scores), N, np.asarray(ranks), margin,
                         red, use_top)
        assert np.allclose(np.asarray(out), ref, rtol=1e-5, atol=1e-5), (
            use_top, red, np.asarray(out), ref)

    # Larger case: exercises multiple grid blocks + lane padding.
    B2, N2 = 300, 8
    scores2, ranks2 = _make_case(jax.random.PRNGKey(1), B2, N2)
    out2 = margin_rank_loss(scores2, ranks2, margin=margin, reduction="mean",
                            use_top_only=False)
    out2 = jax.block_until_ready(out2)
    ref2 = _reference(np.asarray(scores2), N2, np.asarray(ranks2), margin,
                      "mean", False)
    assert np.allclose(np.asarray(out2), ref2, rtol=1e-4, atol=1e-4), (
        np.asarray(out2), ref2)

    print("KERNEL_OK")
</pallas_src>

<mosaic_0001>
module attributes {stable_mosaic.version = 11 : i64} {
  func.func @_margin_kernel(%arg0: i32, %arg1: memref<8x128xf32, #tpu.memory_space<vmem>>, %arg2: memref<1x1x128xf32, #tpu.memory_space<vmem>>) attributes {dimension_semantics = [#tpu.dimension_semantics<parallel>], iteration_bounds = array<i64: 1>, scalar_prefetch = 0 : i64, scratch_operands = 0 : i64, tpu.core_type = #tpu.core_type<tc>, window_params = [{transform_indices = @transform_0, window_bounds = array<i64: 8, 128>}, {transform_indices = @transform_1, window_bounds = array<i64: 1, 1, 128>}]} {
    %c0 = arith.constant 0 : index
    %c0_0 = arith.constant 0 : index
    %0 = vector.load %arg1[%c0, %c0_0] : memref<8x128xf32, #tpu.memory_space<vmem>>, vector<8x128xf32>
    %1 = vector.shape_cast %0 : vector<8x128xf32> to vector<1x8x128xf32>
    %2 = vector.shape_cast %1 : vector<1x8x128xf32> to vector<1x8x128xf32>
    %3 = vector.broadcast %2 : vector<1x8x128xf32> to vector<8x8x128xf32>
    %4 = vector.shape_cast %0 : vector<8x128xf32> to vector<8x1x128xf32>
    %5 = vector.shape_cast %4 : vector<8x1x128xf32> to vector<8x1x128xf32>
    %6 = vector.broadcast %5 : vector<8x1x128xf32> to vector<8x8x128xf32>
    %7 = arith.subf %3, %6 : vector<8x8x128xf32>
    %cst = arith.constant 1.000000e-01 : f32
    %8 = vector.broadcast %cst : f32 to vector<8x8x128xf32>
    %9 = arith.addf %7, %8 : vector<8x8x128xf32>
    %cst_1 = arith.constant 0.000000e+00 : f32
    %10 = vector.broadcast %cst_1 : f32 to vector<8x8x128xf32>
    %11 = arith.maximumf %9, %10 : vector<8x8x128xf32>
    %12 = tpu.iota {dimensions = array<i32: 0>} : vector<8x8x128xi32>
    %13 = tpu.iota {dimensions = array<i32: 1>} : vector<8x8x128xi32>
    %14 = arith.cmpi sgt, %13, %12 : vector<8x8x128xi32>
    %15 = arith.extui %14 : vector<8x8x128xi1> to vector<8x8x128xi32>
    %16 = arith.sitofp %15 : vector<8x8x128xi32> to vector<8x8x128xf32>
    %17 = arith.sitofp %12 : vector<8x8x128xi32> to vector<8x8x128xf32>
    %cst_2 = arith.constant 7.000000e+00 : f32
    %18 = vector.broadcast %cst_2 : f32 to vector<8x8x128xf32>
    %19 = arith.subf %18, %17 : vector<8x8x128xf32>
    %cst_3 = arith.constant 1.000000e+00 : f32
    %20 = vector.broadcast %cst_3 : f32 to vector<8x8x128xf32>
    %21 = arith.maximumf %19, %20 : vector<8x8x128xf32>
    %22 = arith.divf %16, %21 : vector<8x8x128xf32>
    %23 = arith.mulf %11, %22 : vector<8x8x128xf32>
    %cst_4 = arith.constant dense<0.000000e+00> : vector<8x128xf32>
    %24 = vector.multi_reduction <add>, %23, %cst_4 [0] : vector<8x8x128xf32> to vector<8x128xf32>
    %cst_5 = arith.constant dense<0.000000e+00> : vector<128xf32>
    %25 = vector.multi_reduction <add>, %24, %cst_5 [0] : vector<8x128xf32> to vector<128xf32>
    %26 = vector.shape_cast %25 : vector<128xf32> to vector<1x128xf32>
    %c0_6 = arith.constant 0 : index
    %c0_7 = arith.constant 0 : index
    %c0_8 = arith.constant 0 : index
    %27 = vector.load %arg2[%c0_6, %c0_7, %c0_8] : memref<1x1x128xf32, #tpu.memory_space<vmem>>, vector<1x1x128xf32>
    %28 = vector.shape_cast %27 : vector<1x1x128xf32> to vector<1x128xf32>
    %29 = vector.shape_cast %26 : vector<1x128xf32> to vector<1x1x128xf32>
    tpu.vector_store %arg2[%c0_6, %c0_7, %c0_8], %29 {strides = array<i32>} : memref<1x1x128xf32, #tpu.memory_space<vmem>>, vector<1x1x128xf32>,
    return
  }
  func.func @transform_0(%arg0: i32) -> (i32, i32) {
    %c0_i32 = arith.constant 0 : i32
    %c0_i32_0 = arith.constant 0 : i32
    return %c0_i32, %arg0 : i32, i32
  }
  func.func @transform_1(%arg0: i32) -> (i32, i32, i32) {
    %c0_i32 = arith.constant 0 : i32
    %c0_i32_0 = arith.constant 0 : i32
    %c0_i32_1 = arith.constant 0 : i32
    return %arg0, %c0_i32, %c0_i32_0 : i32, i32, i32
  }
}

</mosaic_0001>

<bundles_post_ra>
// kernel: tpu_custom_call.1
= control target key start
LH: loop header
LB: loop body
LE: loop exit
PB: predicated region body
PF: predicated region fallthrough
CT: control target
= control target key end

     0   :  { %6 = vsyncpa [#allocation3], 0  ;;  %s348_s0 = inlined_call_operand.hbm [shape: f32[8,128], index: 0, kind: input, shape index: {}]   ;;  %s349_s1 = inlined_call_operand.hbm [shape: f32[1,1,128], index: 1, kind: output, shape index: {}]  }
   0x1   :  { %7 = vsyncpa [#allocation4], 0  ;;  %s295_s6 = smov [#allocation2]  }
   0x2   :  { %s14_s7 = sshll.u32 %s295_s6, 4  ;;  %s15_s7 = int_to_ptr.vmem [resolvable:$true] %s14_s7 }
   0x3   :  { %s259_s8 = scalar_lea.vmem %s15_s7, 128  ;;  %p264_p1 = scmp.lt.s32.totalorder %s15_s7, %s15_s7 }
   0x4   :  { %p260_p0 = scmp.ne.s32.totalorder %s15_s7, %s259_s8  ;;  %p265_p2 = scmp.lt.s32.totalorder %s259_s8, %s259_s8 }
   0x6   :  { %p266_p3 = por %p265_p2, %p264_p1 }
   0x8   :  { %p267_p4 = pnand %p266_p3, %p260_p0 }
   0xa   :  { %270 = shalt.err (!%p267_p4)
}
   0xb   :  { %17 = dma.hbm_to_vmem [thread:$0]  %s348_s0, 128, %s15_s7, [#allocation3]  }
   0xc   :  { %291 = dma.done.wait [#allocation3], 128  }
   0xd   :  { %292 = vsyncadd [#allocation3], 4294967168  ;;  %v27_v0 = vlaneseq  ;;  %v296_v1 = vmov 1966171168   ;;  %v316_v6 = vld [vmem:[#allocation2] sm:$0xff]  ;;  %v297_v10 = vmov 0.0  }
   0xe   :  { %v25_v2 = vunpack.c.l.s4 %v296_v1  ;;  %v23_v7 = vcombine.high %v316_v6, %v316_v6  ;;  %s298_s0 = smov [#allocation5]  }
   0xf   :  { %v312_v3 = vshrl.u32 %v27_v0, 7  ;;  %s230_s11 = sshll.u32 %s298_s0, 4  ;;  %s231_s11 = int_to_ptr.vmem [resolvable:$true] %s230_s11 }
  0x10   :  { %v26_v4 = vunpack.c.0.s8 %v25_v2  ;;  %s271_s12 = scalar_lea.vmem %s231_s11, 16  ;;  %s275_s13 = scalar_lea.vmem %s231_s11, 32 }
  0x11   :  { %vm138_vm0 = vcmp.gt.s32.totalorder %v312_v3, 0  ;;  %vm139_vm1 = vcmp.gt.s32.totalorder %v312_v3, 1  ;;  %vm140_vm2 = vcmp.gt.s32.totalorder %v312_v3, 2  ;;  %vm141_vm3 = vcmp.gt.s32.totalorder %v312_v3, 3  ;;  %p272_p5 = scmp.ne.s32.totalorder %s231_s11, %s271_s12  ;;  %p276_p6 = scmp.lt.s32.totalorder %s231_s11, %s231_s11 }
  0x12   :  { %v29_v5 = vsub.s32 %v26_v4, %v312_v3  ;;  %v74_v9 = vsub.s32 0, %v312_v3  ;;  %vm142_vm4 = vcmp.gt.s32.totalorder %v312_v3, 4  ;;  %v239_v11 = vsel %vm138_vm0, 1.0, %v297_v10  ;;  %p277_p7 = scmp.lt.s32.totalorder %s275_s13, %s271_s12 }
  0x13   :  { %v240_v15 = vsel %vm139_vm1, 1.0, %v297_v10  ;;  %vm143_vm5 = vcmp.gt.s32.totalorder %v312_v3, 5  ;;  %v241_v16 = vsel %vm140_vm2, 1.0, %v297_v10  ;;  %v242_v17 = vsel %vm141_vm3, 1.0, %v297_v10 }
  0x14   :  { %v30_v8 = vrot.slane %v316_v6, %v29_v5  ;;  %v37_v12 = vrot.slane %v23_v7, %v29_v5  ;;  %v243_v23 = vsel %vm142_vm4, 1.0, %v297_v10  ;;  %v187_v24 = vmul.f32 0.14285715, %v239_v11  ;;  %p278_p8 = por %p277_p7, %p276_p6 }
  0x15   :  { %v189_v25 = vmul.f32 0.16666667, %v240_v15  ;;  %v191_v33 = vmul.f32 0.2, %v241_v16  ;;  %v244_v51 = vsel %vm143_vm5, 1.0, %v297_v10  ;;  %v193_v52 = vmul.f32 0.25, %v242_v17 }
  0x16   :  { %v38_v13 = vcombine.high %v30_v8, %v30_v8  ;;  %v46_v14 = vrot.slane %v30_v8, %v29_v5  ;;  %v39_v18 = vcombine.high %v37_v12, %v37_v12  ;;  %v53_v19 = vrot.slane %v37_v12, %v29_v5  ;;  %p279_p9 = pnand %p278_p8, %p272_p5 }
  0x17   :  { %v195_v59 = vmul.f32 0.33333334, %v243_v23  ;;  %vm144_vm6 = vcmp.gt.s32.totalorder %v312_v3, 6  ;;  %v197_v0 = vmul.f32 0.5, %v244_v51 }
  0x18   :  { %v60_v20 = vrot.slane %v38_v13, %v29_v5  ;;  %v68_v21 = vcombine.high %v46_v14, %v46_v14  ;;  %v75_v22 = vrot.slane %v46_v14, %v74_v9  ;;  %v67_v26 = vrot.slane %v39_v18, %v29_v5 }
  0x19   :  { %v69_v27 = vcombine.high %v53_v19, %v53_v19  ;;  %v91_v31 = vrot.slane %v53_v19, %v74_v9 }
  0x1a   :  { %v70_v28 = vcombine.high %v60_v20, %v60_v20  ;;  %v79_v29 = vrot.slane %v60_v20, %v74_v9  ;;  %v83_v30 = vrot.slane %v68_v21, %v74_v9  ;;  %v112_v32 = vsub.f32 %v316_v6, %v75_v22 }
  0x1b   :  { %v71_v34 = vcombine.high %v67_v26, %v67_v26  ;;  %v95_v36 = vrot.slane %v67_v26, %v74_v9  ;;  %v99_v37 = vrot.slane %v69_v27, %v74_v9  ;;  %v116_v40 = vsub.f32 %v316_v6, %v91_v31 }
  0x1c   :  { %v87_v35 = vrot.slane %v70_v28, %v74_v9  ;;  %v113_v38 = vsub.f32 %v316_v6, %v79_v29  ;;  %v114_v39 = vsub.f32 %v316_v6, %v83_v30  ;;  %v120_v41 = vadd.f32 0.1, %v112_v32 }
  0x1d   :  { %v103_v42 = vrot.slane %v71_v34, %v74_v9  ;;  %v117_v44 = vsub.f32 %v316_v6, %v95_v36  ;;  %v118_v45 = vsub.f32 %v316_v6, %v99_v37  ;;  %v124_v48 = vadd.f32 0.1, %v116_v40 }
  0x1e   :  { %v115_v43 = vsub.f32 %v316_v6, %v87_v35  ;;  %v121_v46 = vadd.f32 0.1, %v113_v38  ;;  %v122_v47 = vadd.f32 0.1, %v114_v39  ;;  %v128_v54 = vmax.f32 %v120_v41, 0.0 }
  0x1f   :  { %v119_v49 = vsub.f32 %v316_v6, %v103_v42  ;;  %v125_v53 = vadd.f32 0.1, %v117_v44  ;;  %v126_v57 = vadd.f32 0.1, %v118_v45  ;;  %v132_v60 = vmax.f32 %v124_v48, 0.0 }
  0x20   :  { %v123_v50 = vadd.f32 0.1, %v115_v43  ;;  %v129_v55 = vmax.f32 %v121_v46, 0.0  ;;  %v130_v56 = vmax.f32 %v122_v47, 0.0  ;;  %v202_v61 = vmul.f32 %v187_v24, %v128_v54 }
  0x21   :  { %v127_v1 = vadd.f32 0.1, %v119_v49  ;;  %v133_v2 = vmax.f32 %v125_v53, 0.0  ;;  %v134_v6 = vmax.f32 %v126_v57, 0.0  ;;  %v206_v7 = vmul.f32 %v195_v59, %v132_v60 }
  0x22   :  { %v131_v58 = vmax.f32 %v123_v50, 0.0  ;;  %v203_v62 = vmul.f32 %v189_v25, %v129_v55  ;;  %v204_v63 = vmul.f32 %v191_v33, %v130_v56  ;;  %v245_v9 = vsel %vm144_vm6, 1.0, %v297_v10 }
  0x23   :  { %v135_v11 = vmax.f32 %v127_v1, 0.0  ;;  %v207_v12 = vmul.f32 %v197_v0, %v133_v2  ;;  %v208_v14 = vmul.f32 %v245_v9, %v134_v6 }
  0x24   :  { %v205_v4 = vmul.f32 %v193_v52, %v131_v58  ;;  %v210_v5 = vadd.f32 %v203_v62, %v202_v61 }
  0x25   :  { %v209_v16 = vmul.f32 0.0, %v135_v11 }
  0x26   :  { %v211_v8 = vadd.f32 %v210_v5, %v204_v63 }
  0x28   :  { %v212_v13 = vadd.f32 %v211_v8, %v205_v4 }
  0x2a   :  { %v213_v15 = vadd.f32 %v212_v13, %v206_v7 }
  0x2c   :  { %v214_v17 = vadd.f32 %v213_v15, %v207_v12 }
  0x2e   :  { %v215_v18 = vadd.f32 %v214_v17, %v208_v14 }
  0x30   :  { %v216_v19 = vadd.f32 %v215_v18, %v209_v16 }
  0x32   :  { %v217_v3 = vrot.slane %v216_v19, 4 }
  0x34   :  { %v218_v20 = vadd.f32 %v217_v3, %v216_v19 }
  0x36   :  { %v219_v21 = vrot.slane %v218_v20, 2 }
  0x38   :  { %v220_v22 = vadd.f32 %v219_v21, %v218_v20 }
  0x3a   :  { %v221_v23 = vrot.slane %v220_v22, 1 }
  0x3c   :  { %v222_v24 = vadd.f32 %v221_v23, %v220_v22 }
  0x3e   :  { %223 = vst [vmem:[#allocation5] sm:$0x1] %v222_v24 }
  0x3f   :  { %282 = shalt.err (!%p279_p9)
}
  0x40   :  { %233 = dma.vmem_to_hbm [thread:$0]  %s231_s11, 16, %s349_s1, [#allocation4]  }
  0x41   :  { %293 = dma.done.wait [#allocation4], 16  }
  0x42   :  { %294 = vsyncadd [#allocation4], 4294967280 }
  0x43   :  { %237 = vsyncpa [#allocation3], 1 }
  0x44   :  { %238 = vsyncpa [#allocation4], 1 }

</bundles_post_ra>
